<compile_context>
chip_gen: v7x
topology: tpu7x:2x2x1
jax: 0.10.0
libtpu: 0.0.40
codegen_flags: <defaults>
</compile_context>

<pallas_src>
import jax
import jax.numpy as jnp
from jax.experimental import pallas as pl
from jax.experimental.pallas import tpu as pltpu

LN_EPS = 1e-5  # torch.nn.LayerNorm default


# ----------------------------------------------------------------------------
# tiling helpers
# ----------------------------------------------------------------------------
def _choose_tile_rows(rows, E, itemsize, *, n_tile_bufs, max_tile_rows=1024,
                      vmem_budget_bytes=24 << 20):
    """Pick the largest row tile that keeps the live double-buffered tiles
    under a conservative VMEM budget (safe on v5e/v6e/v7x)."""
    # Each streamed tile array is double-buffered by the pipeline.
    per_row_bytes = max(1, n_tile_bufs * 2 * E * itemsize)
    t = vmem_budget_bytes // per_row_bytes
    t = max(8, min(int(t), max_tile_rows))
    align = 16 if itemsize == 2 else 8           # bf16 packs 16 sublanes/vreg
    t = max(align, (t // align) * align)
    # Don't make the tile bigger than the (alignment-rounded) row count.
    rows_up = ((rows + align - 1) // align) * align
    return min(t, rows_up)


def _vmem_limit_bytes(tile_rows, E, itemsize, *, n_tile_bufs, extra_bytes=0):
    need = n_tile_bufs * 2 * tile_rows * E * itemsize + extra_bytes + 4 * E * 4
    # Never go below the generous default, never above what v7x can give.
    return int(min(max(2 * need, 32 << 20), 48 << 20))


def _pad_rows(a2, padded_rows):
    rows = a2.shape[0]
    if padded_rows == rows:
        return a2
    return jnp.pad(a2, ((0, padded_rows - rows), (0, 0)))


# ----------------------------------------------------------------------------
# kernels
# ----------------------------------------------------------------------------
def _slc_kernel(x_ref, y_ref, g_ref, b_ref, o_ref):
    """x_ref: residual tile (T, E); y_ref: subModule(x) tile (T, E);
    g_ref/b_ref: LayerNorm affine (1, E)."""
    x = x_ref[...].astype(jnp.float32)
    y = y_ref[...].astype(jnp.float32)
    g = g_ref[...].astype(jnp.float32)          # hoisted casts (single DMA'd row)
    b = b_ref[...].astype(jnp.float32)

    mean = jnp.mean(y, axis=-1, keepdims=True)
    centered = y - mean
    var = jnp.mean(centered * centered, axis=-1, keepdims=True)  # biased, like torch
    xhat = centered * jax.lax.rsqrt(var + LN_EPS)
    normed = xhat * g + b
    # dropout(p=0.01) in eval mode == identity
    o_ref[...] = (x + normed).astype(o_ref.dtype)


def _slc_fused_linear_kernel(x_ref, w_ref, wb_ref, g_ref, b_ref, o_ref):
    """Fused: y = x @ W + bias computed on the MXU, then LayerNorm + residual."""
    x = x_ref[...].astype(jnp.float32)
    g = g_ref[...].astype(jnp.float32)
    b = b_ref[...].astype(jnp.float32)

    y = jnp.dot(x, w_ref[...].astype(jnp.float32),
                preferred_element_type=jnp.float32)
    y = y + wb_ref[...].astype(jnp.float32)

    mean = jnp.mean(y, axis=-1, keepdims=True)
    centered = y - mean
    var = jnp.mean(centered * centered, axis=-1, keepdims=True)
    xhat = centered * jax.lax.rsqrt(var + LN_EPS)
    normed = xhat * g + b
    # dropout(p=0.01) in eval mode == identity
    o_ref[...] = (x + normed).astype(o_ref.dtype)


# ----------------------------------------------------------------------------
# wrappers
# ----------------------------------------------------------------------------
def sublayer_connection(sub_module, x, gamma, beta, *, tile_rows=None):
    """Arbitrary subModule path: x + dropout(LayerNorm(sub_module(x)))."""
    B, S, E = x.shape
    y = sub_module(x)                            # arbitrary sublayer: plain-JAX glue
    assert y.shape == x.shape

    rows = B * S
    itemsize = jnp.dtype(x.dtype).itemsize
    t = tile_rows or _choose_tile_rows(rows, E, itemsize, n_tile_bufs=3)
    padded_rows = pl.cdiv(rows, t) * t

    x2 = _pad_rows(x.reshape(rows, E), padded_rows)
    y2 = _pad_rows(y.reshape(rows, E).astype(x.dtype), padded_rows)
    g2 = gamma.reshape(1, E)
    b2 = beta.reshape(1, E)

    out2 = pl.pallas_call(
        _slc_kernel,
        out_shape=jax.ShapeDtypeStruct((padded_rows, E), x.dtype),
        grid_spec=pltpu.PrefetchScalarGridSpec(
            num_scalar_prefetch=0,
            grid=(padded_rows // t,),
            in_specs=[
                pl.BlockSpec((t, E), lambda i: (i, 0)),
                pl.BlockSpec((t, E), lambda i: (i, 0)),
                pl.BlockSpec((1, E), lambda i: (0, 0)),
                pl.BlockSpec((1, E), lambda i: (0, 0)),
            ],
            out_specs=pl.BlockSpec((t, E), lambda i: (i, 0)),
        ),
        compiler_params=pltpu.CompilerParams(
            dimension_semantics=("parallel",),
            vmem_limit_bytes=_vmem_limit_bytes(t, E, itemsize, n_tile_bufs=3),
        ),
    )(x2, y2, g2, b2)

    return out2[:rows].reshape(B, S, E)


def sublayer_connection_fused_linear(x, W, lin_bias, gamma, beta, *, tile_rows=None):
    """Fused path for the common Linear(E->E) subModule:
    x + dropout(LayerNorm(x @ W + lin_bias))."""
    B, S, E = x.shape
    assert W.shape == (E, E)

    rows = B * S
    itemsize = jnp.dtype(x.dtype).itemsize
    t = tile_rows or _choose_tile_rows(rows, E, itemsize, n_tile_bufs=2)
    padded_rows = pl.cdiv(rows, t) * t

    x2 = _pad_rows(x.reshape(rows, E), padded_rows)
    wb2 = lin_bias.reshape(1, E)
    g2 = gamma.reshape(1, E)
    b2 = beta.reshape(1, E)

    out2 = pl.pallas_call(
        _slc_fused_linear_kernel,
        out_shape=jax.ShapeDtypeStruct((padded_rows, E), x.dtype),
        grid_spec=pltpu.PrefetchScalarGridSpec(
            num_scalar_prefetch=0,
            grid=(padded_rows // t,),
            in_specs=[
                pl.BlockSpec((t, E), lambda i: (i, 0)),     # x tile (streamed)
                pl.BlockSpec((E, E), lambda i: (0, 0)),     # W resident in VMEM
                pl.BlockSpec((1, E), lambda i: (0, 0)),     # linear bias
                pl.BlockSpec((1, E), lambda i: (0, 0)),     # LN gamma
                pl.BlockSpec((1, E), lambda i: (0, 0)),     # LN beta
            ],
            out_specs=pl.BlockSpec((t, E), lambda i: (i, 0)),
        ),
        compiler_params=pltpu.CompilerParams(
            dimension_semantics=("parallel",),
            vmem_limit_bytes=_vmem_limit_bytes(
                t, E, itemsize, n_tile_bufs=2,
                extra_bytes=E * E * jnp.dtype(W.dtype).itemsize),
        ),
    )(x2, W, wb2, g2, b2)

    return out2[:rows].reshape(B, S, E)


# ----------------------------------------------------------------------------
# test
# ----------------------------------------------------------------------------
def _ln_ref(y, gamma, beta):
    mu = jnp.mean(y, axis=-1, keepdims=True)
    var = jnp.mean((y - mu) ** 2, axis=-1, keepdims=True)
    return ((y - mu) / jnp.sqrt(var + LN_EPS)) * gamma + beta


if __name__ == "__main__":
    B, S, E = 2, 16, 128

    key = jax.random.PRNGKey(0)
    kx, kw, kb = jax.random.split(key, 3)

    x = jax.random.normal(kx, (B, S, E), dtype=jnp.float32)

    # SubLayerConnection parameters (torch.nn.LayerNorm default init):
    gamma = jnp.ones((E,), dtype=jnp.float32)
    beta = jnp.zeros((E,), dtype=jnp.float32)

    # --- fused path: subModule is a Linear(E -> E) --------------------------
    W = jax.random.normal(kw, (E, E), dtype=jnp.float32) * 0.02
    lin_bias = jax.random.normal(kb, (E,), dtype=jnp.float32) * 0.02

    out_fused = sublayer_connection_fused_linear(x, W, lin_bias, gamma, beta)
    out_fused = jax.block_until_ready(out_fused)

    y_lin = jnp.dot(x, W) + lin_bias
    ref_fused = x + _ln_ref(y_lin, gamma, beta)     # eval-mode dropout == identity
    assert jnp.allclose(out_fused, ref_fused, atol=1e-4, rtol=1e-4), \
        "fused-linear path mismatch vs reference"

    # --- generic path: arbitrary subModule (plain-JAX glue) -----------------
    sub_module = lambda t: jnp.tanh(t) * 1.5 + 0.25
    out_gen = sublayer_connection(sub_module, x, gamma, beta)
    out_gen = jax.block_until_ready(out_gen)

    ref_gen = x + _ln_ref(sub_module(x), gamma, beta)
    assert jnp.allclose(out_gen, ref_gen, atol=1e-4, rtol=1e-4), \
        "generic path mismatch vs reference"

    print("KERNEL_OK")
</pallas_src>

<mosaic_0001>
module attributes {stable_mosaic.version = 11 : i64} {
  func.func @_slc_fused_linear_kernel(%arg0: i32, %arg1: memref<32x128xf32, #tpu.memory_space<vmem>>, %arg2: memref<128x128xf32, #tpu.memory_space<vmem>>, %arg3: memref<1x128xf32, #tpu.memory_space<vmem>>, %arg4: memref<1x128xf32, #tpu.memory_space<vmem>>, %arg5: memref<1x128xf32, #tpu.memory_space<vmem>>, %arg6: memref<32x128xf32, #tpu.memory_space<vmem>>) attributes {dimension_semantics = [#tpu.dimension_semantics<parallel>], iteration_bounds = array<i64: 1>, scalar_prefetch = 0 : i64, scratch_operands = 0 : i64, tpu.core_type = #tpu.core_type<tc>, window_params = [{transform_indices = @transform_0, window_bounds = array<i64: 32, 128>}, {pipeline_mode = #tpu.pipeline_mode<synchronous>, transform_indices = @transform_1, window_bounds = array<i64: 128, 128>}, {pipeline_mode = #tpu.pipeline_mode<synchronous>, transform_indices = @transform_2, window_bounds = array<i64: 1, 128>}, {pipeline_mode = #tpu.pipeline_mode<synchronous>, transform_indices = @transform_3, window_bounds = array<i64: 1, 128>}, {pipeline_mode = #tpu.pipeline_mode<synchronous>, transform_indices = @transform_4, window_bounds = array<i64: 1, 128>}, {transform_indices = @transform_5, window_bounds = array<i64: 32, 128>}]} {
    %c0 = arith.constant 0 : index
    %c0_0 = arith.constant 0 : index
    %0 = vector.load %arg1[%c0, %c0_0] : memref<32x128xf32, #tpu.memory_space<vmem>>, vector<32x128xf32>
    %c0_1 = arith.constant 0 : index
    %c0_2 = arith.constant 0 : index
    %1 = vector.load %arg4[%c0_1, %c0_2] : memref<1x128xf32, #tpu.memory_space<vmem>>, vector<1x128xf32>
    %c0_3 = arith.constant 0 : index
    %c0_4 = arith.constant 0 : index
    %2 = vector.load %arg5[%c0_3, %c0_4] : memref<1x128xf32, #tpu.memory_space<vmem>>, vector<1x128xf32>
    %c0_5 = arith.constant 0 : index
    %c0_6 = arith.constant 0 : index
    %3 = vector.load %arg2[%c0_5, %c0_6] : memref<128x128xf32, #tpu.memory_space<vmem>>, vector<128x128xf32>
    %cst = arith.constant dense<0.000000e+00> : vector<32x128xf32>
    %4 = tpu.matmul %0, %3, %cst {dimension_numbers = #tpu.dot_dimension_numbers<[1], [0], [0], [1], [0, 0, 1, 1], [], []>} : vector<32x128xf32>, vector<128x128xf32>, vector<32x128xf32> -> vector<32x128xf32>
    %c0_7 = arith.constant 0 : index
    %c0_8 = arith.constant 0 : index
    %5 = vector.load %arg3[%c0_7, %c0_8] : memref<1x128xf32, #tpu.memory_space<vmem>>, vector<1x128xf32>
    %6 = vector.broadcast %5 : vector<1x128xf32> to vector<32x128xf32>
    %7 = arith.addf %4, %6 : vector<32x128xf32>
    %cst_9 = arith.constant dense<0.000000e+00> : vector<32xf32>
    %8 = vector.multi_reduction <add>, %7, %cst_9 [1] : vector<32x128xf32> to vector<32xf32>
    %9 = vector.shape_cast %8 : vector<32xf32> to vector<32x1xf32>
    %cst_10 = arith.constant 1.280000e+02 : f32
    %10 = vector.broadcast %cst_10 : f32 to vector<32x1xf32>
    %11 = arith.divf %9, %10 : vector<32x1xf32>
    %12 = vector.broadcast %11 : vector<32x1xf32> to vector<32x128xf32>
    %13 = arith.subf %7, %12 : vector<32x128xf32>
    %14 = arith.mulf %13, %13 : vector<32x128xf32>
    %cst_11 = arith.constant dense<0.000000e+00> : vector<32xf32>
    %15 = vector.multi_reduction <add>, %14, %cst_11 [1] : vector<32x128xf32> to vector<32xf32>
    %16 = vector.shape_cast %15 : vector<32xf32> to vector<32x1xf32>
    %cst_12 = arith.constant 1.280000e+02 : f32
    %17 = vector.broadcast %cst_12 : f32 to vector<32x1xf32>
    %18 = arith.divf %16, %17 : vector<32x1xf32>
    %cst_13 = arith.constant 9.99999974E-6 : f32
    %19 = vector.broadcast %cst_13 : f32 to vector<32x1xf32>
    %20 = arith.addf %18, %19 : vector<32x1xf32>
    %21 = math.rsqrt %20 : vector<32x1xf32>
    %22 = vector.broadcast %21 : vector<32x1xf32> to vector<32x128xf32>
    %23 = arith.mulf %13, %22 : vector<32x128xf32>
    %24 = vector.broadcast %1 : vector<1x128xf32> to vector<32x128xf32>
    %25 = arith.mulf %23, %24 : vector<32x128xf32>
    %26 = vector.broadcast %2 : vector<1x128xf32> to vector<32x128xf32>
    %27 = arith.addf %25, %26 : vector<32x128xf32>
    %28 = arith.addf %0, %27 : vector<32x128xf32>
    %c0_14 = arith.constant 0 : index
    %c0_15 = arith.constant 0 : index
    %29 = vector.load %arg6[%c0_14, %c0_15] : memref<32x128xf32, #tpu.memory_space<vmem>>, vector<32x128xf32>
    tpu.vector_store %arg6[%c0_14, %c0_15], %28 {strides = array<i32>} : memref<32x128xf32, #tpu.memory_space<vmem>>, vector<32x128xf32>,
    return
  }
  func.func @transform_0(%arg0: i32) -> (i32, i32) {
    %c0_i32 = arith.constant 0 : i32
    %c0_i32_0 = arith.constant 0 : i32
    return %arg0, %c0_i32 : i32, i32
  }
  func.func @transform_1(%arg0: i32) -> (i32, i32) {
    %c0_i32 = arith.constant 0 : i32
    %c0_i32_0 = arith.constant 0 : i32
    %c0_i32_1 = arith.constant 0 : i32
    return %c0_i32, %c0_i32_0 : i32, i32
  }
  func.func @transform_2(%arg0: i32) -> (i32, i32) {
    %c0_i32 = arith.constant 0 : i32
    %c0_i32_0 = arith.constant 0 : i32
    %c0_i32_1 = arith.constant 0 : i32
    return %c0_i32, %c0_i32_0 : i32, i32
  }
  func.func @transform_3(%arg0: i32) -> (i32, i32) {
    %c0_i32 = arith.constant 0 : i32
    %c0_i32_0 = arith.constant 0 : i32
    %c0_i32_1 = arith.constant 0 : i32
    return %c0_i32, %c0_i32_0 : i32, i32
  }
  func.func @transform_4(%arg0: i32) -> (i32, i32) {
    %c0_i32 = arith.constant 0 : i32
    %c0_i32_0 = arith.constant 0 : i32
    %c0_i32_1 = arith.constant 0 : i32
    return %c0_i32, %c0_i32_0 : i32, i32
  }
  func.func @transform_5(%arg0: i32) -> (i32, i32) {
    %c0_i32 = arith.constant 0 : i32
    %c0_i32_0 = arith.constant 0 : i32
    return %arg0, %c0_i32 : i32, i32
  }
}

</mosaic_0001>

<bundles_post_ra>
// kernel: tpu_custom_call.1
= control target key start
LH: loop header
LB: loop body
LE: loop exit
PB: predicated region body
PF: predicated region fallthrough
CT: control target
= control target key end

     0   :  { %10 = vsyncpa [#allocation3], 0  ;;  %s553_s0 = inlined_call_operand.hbm [shape: f32[32,128], index: 0, kind: input, shape index: {}]   ;;  %s554_s1 = inlined_call_operand.hbm [shape: f32[128,128], index: 1, kind: input, shape index: {}]   ;;  %s555_s2 = inlined_call_operand.vmem [shape: f32[1,128], index: 2, kind: input, shape index: {}]   ;;  %s556_s3 = inlined_call_operand.vmem [shape: f32[1,128], index: 3, kind: input, shape index: {}]   ;;  %s557_s4 = inlined_call_operand.vmem [shape: f32[1,128], index: 4, kind: input, shape index: {}]   ;;  %s558_s5 = inlined_call_operand.hbm [shape: f32[32,128], index: 5, kind: output, shape index: {}]  }
   0x1   :  { %11 = vsyncpa [#allocation6], 0 }
   0x2   :  { %12 = vsyncpa [#allocation4], 0  ;;  %s448_s18 = smov [#allocation2]   ;;  %s376_s22 = scalar_lea.hbm %s553_s0, 512 }
   0x3   :  { %s18_s19 = sshll.u32 %s448_s18, 4  ;;  %p377_p0 = scmp.ne.s32.totalorder %s553_s0, %s376_s22  ;;  %s19_s19 = int_to_ptr.vmem [resolvable:$true] %s18_s19 }
   0x4   :  { %p380_p1 = scmp.lt.u32.totalorder %s376_s22, %s553_s0 }
   0x6   :  { %p382_p2 = pnand %p380_p1, %p377_p0 }
   0x8   :  { %385 = shalt.err (!%p382_p2)
}
   0x9   :  { %s386_s27 = scalar_lea.vmem %s19_s19, 512  ;;  %p391_p4 = scmp.lt.s32.totalorder %s19_s19, %s19_s19 }
   0xa   :  { %p387_p3 = scmp.ne.s32.totalorder %s19_s19, %s386_s27  ;;  %p392_p5 = scmp.lt.s32.totalorder %s386_s27, %s386_s27 }
   0xc   :  { %p393_p6 = por %p392_p5, %p391_p4 }
   0xe   :  { %p394_p7 = pnand %p393_p6, %p387_p3 }
  0x10   :  { %397 = shalt.err (!%p394_p7)
}
  0x11   :  { %s449_s28 = smov 128   ;;  %s450_s29 = smov 8  }
  0x12   :  { %24 = dma.hbm_to_vmem [thread:$0]  %s553_s0, 512, %s19_s19, [#allocation3], %s449_s28, %s449_s28, %s450_s29  }
  0x13   :  { %s451_s7 = smov [#allocation5]   ;;  %s398_s11 = scalar_lea.hbm %s554_s1, 2048 }
  0x14   :  { %s30_s8 = sshll.u32 %s451_s7, 4  ;;  %p399_p8 = scmp.ne.s32.totalorder %s554_s1, %s398_s11  ;;  %s31_s8 = int_to_ptr.vmem [resolvable:$true] %s30_s8 }
  0x15   :  { %p402_p9 = scmp.lt.u32.totalorder %s398_s11, %s554_s1 }
  0x17   :  { %p404_p10 = pnand %p402_p9, %p399_p8 }
  0x19   :  { %407 = shalt.err (!%p404_p10)
}
  0x1a   :  { %s408_s16 = scalar_lea.vmem %s31_s8, 2048  ;;  %p413_p12 = scmp.lt.s32.totalorder %s31_s8, %s31_s8 }
  0x1b   :  { %p409_p11 = scmp.ne.s32.totalorder %s31_s8, %s408_s16  ;;  %p414_p13 = scmp.lt.s32.totalorder %s408_s16, %s408_s16 }
  0x1d   :  { %p415_p0 = por %p414_p13, %p413_p12 }
  0x1f   :  { %p416_p1 = pnand %p415_p0, %p409_p11 }
  0x21   :  { %419 = shalt.err (!%p416_p1)
}
  0x22   :  { %36 = dma.hbm_to_vmem [thread:$0]  %s554_s1, 2048, %s31_s8, [#allocation6], %s449_s28, %s449_s28, %s450_s29  }
  0x23   :  { %442 = dma.done.wait [#allocation3], 512  }
  0x24   :  { %443 = vsyncadd [#allocation3], 4294966784 }
  0x25   :  { %444 = dma.done.wait [#allocation6], 2048  }
  0x26   :  { %445 = vsyncadd [#allocation6], 4294965248  ;;  %v55_v0 = vld [vmem:[#allocation5] sm:$0xff]  ;;  %v56_v1 = vld [vmem:[#allocation5 + $0x8] sm:$0xff] }
  0x27   :  { %v57_v2 = vld [vmem:[#allocation5 + $0x10] sm:$0xff]  ;;  %v315_v3 = vpack.c.bf16 %v56_v1, %v55_v0  ;;  %v58_v4 = vld [vmem:[#allocation5 + $0x18] sm:$0xff]  ;;  %v59_v6 = vld [vmem:[#allocation5 + $0x20] sm:$0xff] }
  0x28   :  { %v319_v5 = vpack.c.bf16 %v58_v4, %v57_v2  ;;  %v60_v7 = vld [vmem:[#allocation5 + $0x28] sm:$0xff]  ;;  %v513_v9 = vld [vmem:[#allocation2] sm:$0xff]  ;;  %v515_v10 = vld [vmem:[#allocation2 + $0x10] sm:$0xff] }
  0x29   :  { %316 = vmatprep.subr.bf16.mxu0 %v315_v3  ;;  %347 = vmatprep.subr.bf16.mxu1 %v315_v3  ;;  %v323_v8 = vpack.c.bf16 %v60_v7, %v59_v6  ;;  %v61_v11 = vld [vmem:[#allocation5 + $0x30] sm:$0xff]  ;;  %v62_v12 = vld [vmem:[#allocation5 + $0x38] sm:$0xff]  ;;  %v63_v14 = vld [vmem:[#allocation5 + $0x40] sm:$0xff] }
  0x2a   :  { %318 = vmatpush3.bf16.msra.mxu0 %v315_v3  ;;  %355 = vmatpush3.bf16.msra.mxu1 %v315_v3  ;;  %v327_v13 = vpack.c.bf16 %v62_v12, %v61_v11  ;;  %v64_v15 = vld [vmem:[#allocation5 + $0x48] sm:$0xff]  ;;  %v65_v17 = vld [vmem:[#allocation5 + $0x50] sm:$0xff]  ;;  %v66_v18 = vld [vmem:[#allocation5 + $0x58] sm:$0xff] }
  0x2b   :  { %320 = vmatprep.subr.bf16.mxu0 %v319_v5  ;;  %348 = vmatprep.subr.bf16.mxu1 %v319_v5  ;;  %v331_v16 = vpack.c.bf16 %v64_v15, %v63_v14  ;;  %v335_v19 = vpack.c.bf16 %v66_v18, %v65_v17  ;;  %v67_v20 = vld [vmem:[#allocation5 + $0x60] sm:$0xff]  ;;  %v68_v21 = vld [vmem:[#allocation5 + $0x68] sm:$0xff]  ;;  %v69_v23 = vld [vmem:[#allocation5 + $0x70] sm:$0xff] }
  0x2c   :  { %309 = vmatprep.mubr.f32.mxu0 %v513_v9  ;;  %312 = vmatprep.mubr.f32.mxu1 %v515_v10  ;;  %v339_v22 = vpack.c.bf16 %v68_v21, %v67_v20  ;;  %v70_v24 = vld [vmem:[#allocation5 + $0x78] sm:$0xff]  ;;  %v519_v26 = vld [vmem:[#allocation2 + $0x8] sm:$0xff]  ;;  %v254_v28 = vld [vmem:[%s555_s2] ss:$0 sm:$0xff] }
  0x2d   :  { %v343_v25 = vpack.c.bf16 %v70_v24, %v69_v23  ;;  %v521_v27 = vld [vmem:[#allocation2 + $0x18] sm:$0xff]  ;;  %v255_v2 = vld [vmem:[%s556_s3] ss:$0 sm:$0xff]  ;;  %s452_s3 = smov [#allocation7]  }
  0x2e   :  { %322 = vmatpush3.bf16.msra.mxu0 %v319_v5  ;;  %356 = vmatpush3.bf16.msra.mxu1 %v319_v5  ;;  %v256_v4 = vld [vmem:[%s557_s4] ss:$0 sm:$0xff]  ;;  %s241_s4 = sshll.u32 %s452_s3, 4  ;;  %s242_s4 = int_to_ptr.vmem [resolvable:$true] %s241_s4 }
  0x2f   :  { %324 = vmatprep.subr.bf16.mxu0 %v323_v8  ;;  %349 = vmatprep.subr.bf16.mxu1 %v323_v8  ;;  %s420_s22 = scalar_lea.vmem %s242_s4, 512  ;;  %p425_p3 = scmp.lt.s32.totalorder %s242_s4, %s242_s4 }
  0x30   :  { %p421_p2 = scmp.ne.s32.totalorder %s242_s4, %s420_s22  ;;  %p426_p4 = scmp.lt.s32.totalorder %s420_s22, %s420_s22 }
  0x32   :  { %326 = vmatpush3.bf16.msra.mxu0 %v323_v8  ;;  %357 = vmatpush3.bf16.msra.mxu1 %v323_v8  ;;  %p427_p5 = por %p426_p4, %p425_p3 }
  0x33   :  { %328 = vmatprep.subr.bf16.mxu0 %v327_v13  ;;  %350 = vmatprep.subr.bf16.mxu1 %v327_v13 }
  0x34   :  { %p428_p6 = pnand %p427_p5, %p421_p2 }
  0x36   :  { %330 = vmatpush3.bf16.msra.mxu0 %v327_v13  ;;  %358 = vmatpush3.bf16.msra.mxu1 %v327_v13 }
  0x37   :  { %332 = vmatprep.subr.bf16.mxu0 %v331_v16  ;;  %351 = vmatprep.subr.bf16.mxu1 %v331_v16 }
  0x3a   :  { %334 = vmatpush3.bf16.msra.mxu0 %v331_v16  ;;  %359 = vmatpush3.bf16.msra.mxu1 %v331_v16 }
  0x3b   :  { %336 = vmatprep.subr.bf16.mxu0 %v335_v19  ;;  %352 = vmatprep.subr.bf16.mxu1 %v335_v19 }
  0x3e   :  { %338 = vmatpush3.bf16.msra.mxu0 %v335_v19  ;;  %360 = vmatpush3.bf16.msra.mxu1 %v335_v19 }
  0x3f   :  { %340 = vmatprep.subr.bf16.mxu0 %v339_v22  ;;  %353 = vmatprep.subr.bf16.mxu1 %v339_v22 }
  0x42   :  { %342 = vmatpush3.bf16.msra.mxu0 %v339_v22  ;;  %361 = vmatpush3.bf16.msra.mxu1 %v339_v22 }
  0x43   :  { %344 = vmatprep.subr.bf16.mxu0 %v343_v25  ;;  %354 = vmatprep.subr.bf16.mxu1 %v343_v25 }
  0x46   :  { %346 = vmatpush3.bf16.msra.mxu0 %v343_v25  ;;  %362 = vmatpush3.bf16.msra.mxu1 %v343_v25 }
  0x49   :  { %310 = vmatmul.mubr.f32.vlgmr.msra.gmra.mrb[0].mxu0 %v519_v26  ;;  %313 = vmatmul.mubr.f32.vlgmr.msra.gmra.mrb[0].mxu1 %v521_v27 }
 0x11c   :  { %v311_v29 = vpop.f32.mrb[0].mxu0  ;;  %v314_v30 = vpop.f32.mrb[0].mxu1 }
 0x11d   :  { %v144_v31 = vpop.f32.mrb[1].mxu0  ;;  %v154_v32 = vpop.f32.mrb[1].mxu1  ;;  %v160_v35 = vadd.f32 %v314_v30, %v254_v28  ;;  %v150_v36 = vadd.f32 %v311_v29, %v254_v28 }
 0x11e   :  { %v145_v33 = vadd.f32 %v254_v28, %v144_v31  ;;  %v155_v34 = vadd.f32 %v254_v28, %v154_v32 }
 0x120   :  { %167 = vadd.xlane.f32.xlu1 %v155_v34  ;;  %163 = vadd.xlane.f32.xlu0 %v145_v33 }
 0x124   :  { %169 = vadd.xlane.f32.xlu1 %v160_v35  ;;  %165 = vadd.xlane.f32.xlu0 %v150_v36 }
 0x1ad   :  { %v168_v37 = vpop.xlane.xlu1 %167  ;;  %v164_v38 = vpop.xlane.xlu0 %163 }
 0x1ae   :  { %v174_v39 = vmul.f32 0.0078125, %v168_v37  ;;  %v172_v40 = vmul.f32 0.0078125, %v164_v38 }
 0x1b0   :  { %v176_v41 = vsub.f32 %v145_v33, %v172_v40  ;;  %v178_v44 = vsub.f32 %v155_v34, %v174_v39 }
 0x1b1   :  { %v170_v42 = vpop.xlane.xlu1 %169  ;;  %v166_v43 = vpop.xlane.xlu0 %165 }
 0x1b2   :  { %v175_v45 = vmul.f32 0.0078125, %v170_v42  ;;  %v173_v46 = vmul.f32 0.0078125, %v166_v43  ;;  %v180_v47 = vmul.f32 %v176_v41, %v176_v41  ;;  %v182_v50 = vmul.f32 %v178_v44, %v178_v44 }
 0x1b4   :  { %v177_v48 = vsub.f32 %v150_v36, %v173_v46  ;;  %184 = vadd.xlane.f32.xlu0 %v180_v47  ;;  %v179_v49 = vsub.f32 %v160_v35, %v175_v45 }
 0x1b6   :  { %v181_v51 = vmul.f32 %v177_v48, %v177_v48  ;;  %v183_v52 = vmul.f32 %v179_v49, %v179_v49 }
 0x1b8   :  { %188 = vadd.xlane.f32.xlu0 %v182_v50  ;;  %186 = vadd.xlane.f32.xlu1 %v181_v51 }
 0x1bc   :  { %190 = vadd.xlane.f32.xlu1 %v183_v52 }
 0x241   :  { %v185_v53 = vpop.xlane.xlu0 %184 }
 0x242   :  { %v192_v54 = vmul.f32 0.0078125, %v185_v53 }
 0x244   :  { %v196_v55 = vadd.f32 1e-05, %v192_v54 }
 0x245   :  { %v187_v56 = vpop.xlane.xlu1 %186  ;;  %v189_v57 = vpop.xlane.xlu0 %188 }
 0x246   :  { %368 = vrsqrt.f32 %v196_v55  ;;  %v193_v58 = vmul.f32 0.0078125, %v187_v56  ;;  %v194_v59 = vmul.f32 0.0078125, %v189_v57 }
 0x248   :  { %v197_v60 = vadd.f32 1e-05, %v193_v58  ;;  %v198_v61 = vadd.f32 1e-05, %v194_v59 }
 0x249   :  { %v191_v62 = vpop.xlane.xlu1 %190 }
 0x24a   :  { %370 = vrsqrt.f32 %v197_v60  ;;  %v195_v63 = vmul.f32 0.0078125, %v191_v62 }
 0x24b   :  { %372 = vrsqrt.f32 %v198_v61 }
 0x24c   :  { %v199_v0 = vadd.f32 1e-05, %v195_v63 }
 0x24e   :  { %374 = vrsqrt.f32 %v199_v0 }
 0x250   :  { %v369_v1 = vpop.eup %368 }
 0x251   :  { %v204_v3 = vmul.f32 %v369_v1, %v176_v41 }
 0x253   :  { %v214_v5 = vmul.f32 %v255_v2, %v204_v3 }
 0x254   :  { %v371_v6 = vpop.eup %370 }
 0x255   :  { %v373_v7 = vpop.eup %372  ;;  %v205_v8 = vmul.f32 %v371_v6, %v177_v48  ;;  %v224_v11 = vadd.f32 %v256_v4, %v214_v5 }
 0x256   :  { %v206_v12 = vmul.f32 %v373_v7, %v178_v44 }
 0x257   :  { %v215_v13 = vmul.f32 %v255_v2, %v205_v8  ;;  %v228_v14 = vadd.f32 %v224_v11, %v513_v9 }
 0x258   :  { %v375_v15 = vpop.eup %374  ;;  %v216_v16 = vmul.f32 %v255_v2, %v206_v12 }
 0x259   :  { %v207_v17 = vmul.f32 %v375_v15, %v179_v49  ;;  %v225_v18 = vadd.f32 %v256_v4, %v215_v13  ;;  %232 = vst [vmem:[#allocation7] sm:$0xff] %v228_v14 }
 0x25a   :  { %v226_v19 = vadd.f32 %v256_v4, %v216_v16 }
 0x25b   :  { %v217_v20 = vmul.f32 %v255_v2, %v207_v17  ;;  %v229_v21 = vadd.f32 %v225_v18, %v519_v26 }
 0x25c   :  { %v230_v22 = vadd.f32 %v226_v19, %v515_v10 }
 0x25d   :  { %v227_v23 = vadd.f32 %v256_v4, %v217_v20  ;;  %233 = vst [vmem:[#allocation7 + $0x8] sm:$0xff] %v229_v21 }
 0x25e   :  { %234 = vst [vmem:[#allocation7 + $0x10] sm:$0xff] %v230_v22 }
 0x25f   :  { %v231_v24 = vadd.f32 %v227_v23, %v521_v27 }
 0x261   :  { %235 = vst [vmem:[#allocation7 + $0x18] sm:$0xff] %v231_v24 }
 0x262   :  { %431 = shalt.err (!%p428_p6)
}
 0x263   :  { %s432_s25 = scalar_lea.hbm %s558_s5, 512 }
 0x264   :  { %p433_p7 = scmp.ne.s32.totalorder %s558_s5, %s432_s25  ;;  %p436_p8 = scmp.lt.u32.totalorder %s432_s25, %s558_s5 }
 0x266   :  { %p438_p9 = pnand %p436_p8, %p433_p7 }
 0x268   :  { %441 = shalt.err (!%p438_p9)
}
 0x269   :  { %247 = dma.vmem_to_hbm [thread:$0]  %s242_s4, 512, %s558_s5, [#allocation4], %s449_s28, %s449_s28, %s450_s29  }
 0x26a   :  { %446 = dma.done.wait [#allocation4], 512  }
 0x26b   :  { %447 = vsyncadd [#allocation4], 4294966784 }
 0x26c   :  { %251 = vsyncpa [#allocation3], 1 }
 0x26d   :  { %252 = vsyncpa [#allocation6], 1 }
 0x26e   :  { %253 = vsyncpa [#allocation4], 1 }

</bundles_post_ra>
